<compile_context>
chip_gen: v7x
topology: tpu7x:2x2x1
jax: 0.10.0
libtpu: 0.0.40
codegen_flags: <defaults>
</compile_context>

<pallas_src>
import numpy as np
import jax
import jax.numpy as jnp
from jax.experimental import pallas as pl
from jax.experimental.pallas import tpu as pltpu

CLIP_MEAN = (0.48145466, 0.4578275, 0.40821073)
CLIP_STD = (0.26862954, 0.26130258, 0.27577711)
RESCALE = 0.00392156862745098  # 1/255

# Input-row band starts are rounded down to a multiple of this so the dynamic
# sublane slice of the uint8 image block stays aligned to its (32, 128) tiling.
_BAND_ALIGN = 32


def _bilinear_weights(out_size, in_size):
    """Interpolation matrix W (out, in) matching
    torch.nn.functional.interpolate(mode='bilinear', align_corners=False),
    plus the two tap indices per output row.  Pure numpy -> trace-time consts."""
    scale = in_size / out_size
    coords = (np.arange(out_size, dtype=np.float64) + 0.5) * scale - 0.5
    coords = np.maximum(coords, 0.0)
    idx0 = np.minimum(np.floor(coords).astype(np.int64), in_size - 1)
    frac = (coords - idx0).astype(np.float32)
    idx1 = np.minimum(idx0 + 1, in_size - 1)
    w = np.zeros((out_size, in_size), dtype=np.float32)
    rows = np.arange(out_size)
    w[rows, idx0] = 1.0 - frac
    w[rows, idx1] += frac          # += handles idx0 == idx1 at the right edge
    return w, idx0, idx1


def _pick_row_tile(out_rows, tm_req):
    """Largest TM <= tm_req that divides out_rows and is a multiple of 16
    (bf16 sublane packing -> unmasked stores); fall back to a single tile."""
    tm = min(tm_req, out_rows)
    tm -= tm % 16
    while tm >= 16 and out_rows % tm != 0:
        tm -= 16
    return tm if tm >= 16 else out_rows


def _row_band_table(idx0, idx1, in_size, tm, align=_BAND_ALIGN):
    """Per-row-tile input-row band starts (aligned) and the common band width."""
    out_size = idx0.shape[0]
    num_tiles = out_size // tm
    lo = idx0.reshape(num_tiles, tm).min(axis=1)
    hi = idx1.reshape(num_tiles, tm).max(axis=1)
    starts = (lo // align) * align
    span = int((hi - starts).max()) + 1
    k_band = int(-(-span // align) * align)          # round up to align
    if k_band >= in_size or in_size % align != 0:
        # Banding not profitable (or not tile-aligned): use the full height.
        return np.zeros((num_tiles,), np.int32), int(in_size)
    starts = np.minimum(starts, in_size - k_band).astype(np.int32)
    return starts, k_band


def _preprocess_kernel(starts_ref, a_ref, b_ref, x_ref, wy_ref, wxt_ref, o_ref):
    """One (batch n, output-row-tile i) grid step.

    starts_ref: (num_tiles,) int32 SMEM  -- input-row band start per row tile
    a_ref/b_ref: (C,) f32 SMEM           -- folded rescale/normalize affine
    x_ref  : (1, C, H_in, W_in) uint8    -- whole image, resident across i
    wy_ref : (TM, K_band) bf16           -- banded row-resize slab for tile i
    wxt_ref: (W_in, W_out) bf16          -- column-resize matrix (grid invariant)
    o_ref  : (1, C, TM, W_out)           -- output row tile
    """
    i = pl.program_id(1)
    C = x_ref.shape[1]
    TM, K_band = wy_ref.shape

    start = pl.multiple_of(starts_ref[i], _BAND_ALIGN)
    wy = wy_ref[...]
    wxt = wxt_ref[...]

    # Banded first resize matmul per channel (uint8 band -> bf16, values 0..255
    # are exact in bf16); stack channels so the second resize is ONE larger MXU
    # job.  Row tiling bounds every f32 temporary to (TM, W_in)/(TM, W_out).
    tmp = []
    for c in range(C):  # static unroll, C == 3
        xc = x_ref[0, c, pl.ds(start, K_band), :]
        xc = xc.astype(jnp.float32).astype(jnp.bfloat16)
        tmp.append(
            jnp.dot(wy, xc, preferred_element_type=jnp.float32)
            .astype(jnp.bfloat16))
    stacked = jnp.concatenate(tmp, axis=0)                             # (C*TM, W_in)
    res = jnp.dot(stacked, wxt, preferred_element_type=jnp.float32)    # (C*TM, W_out)

    # Folded rescale+normalize applied post-resize (bilinear rows sum to 1):
    # y_c = a_c * resize(x)_c + b_c.  Kept in f32 on the VPU, one cast to bf16.
    for c in range(C):
        o_ref[0, c] = (res[c * TM:(c + 1) * TM, :] * a_ref[c]
                       + b_ref[c]).astype(o_ref.dtype)


def clip_normalize_bilinear_resize(x_u8, mean, std, out_hw, rescale=RESCALE,
                                   out_dtype=jnp.bfloat16, row_tile=128):
    """x_u8: (N, C, H_in, W_in) raw uint8 pixels.  Returns (N, C, H_out, W_out)
    out_dtype: CLIP rescale+normalize followed by bilinear resize
    (align_corners=False), fused into one row-tiled, band-sparse kernel."""
    N, C, H_in, W_in = x_u8.shape
    H_out, W_out = out_hw

    TM = _pick_row_tile(H_out, row_tile)
    num_tiles = H_out // TM

    wy_full, idx0, idx1 = _bilinear_weights(H_out, H_in)
    wx_full, _, _ = _bilinear_weights(W_out, W_in)
    starts_np, K_band = _row_band_table(idx0, idx1, H_in, TM)

    # Per-row-tile banded slabs of Wy: (num_tiles, TM, K_band).  All nonzero
    # taps of rows [t*TM, (t+1)*TM) lie inside [starts[t], starts[t]+K_band).
    wy_banded = np.stack(
        [wy_full[t * TM:(t + 1) * TM, starts_np[t]:starts_np[t] + K_band]
         for t in range(num_tiles)], axis=0)

    # bf16 weights: full MXU rate, half the weight DMA.  (Slight row-sum!=1
    # bias from bf16 rounding is << the test tolerance; keep f32 weights if
    # exact parity with the torch pipeline is required.)
    wy = jnp.asarray(wy_banded, dtype=jnp.bfloat16)
    wxt = jnp.asarray(wx_full.T, dtype=jnp.bfloat16)        # (W_in, W_out)
    starts = jnp.asarray(starts_np)

    mean = np.asarray(mean, np.float32)
    std = np.asarray(std, np.float32)
    a = jnp.asarray(rescale / std, dtype=jnp.float32)        # (C,)
    b = jnp.asarray(-mean / std, dtype=jnp.float32)          # (C,)

    flops = int(2 * N * C * (H_out * K_band * W_in + H_out * W_in * W_out))
    bytes_accessed = int(x_u8.size + N * C * H_out * W_out * 2
                         + (wy.size + wxt.size) * 2
                         + 4 * (starts.size + 2 * C))

    return pl.pallas_call(
        _preprocess_kernel,
        out_shape=jax.ShapeDtypeStruct((N, C, H_out, W_out), out_dtype),
        grid_spec=pltpu.PrefetchScalarGridSpec(
            num_scalar_prefetch=0,
            grid=(N, num_tiles),
            in_specs=[
                pl.BlockSpec(memory_space=pltpu.MemorySpace.SMEM),  # starts
                pl.BlockSpec(memory_space=pltpu.MemorySpace.SMEM),  # a
                pl.BlockSpec(memory_space=pltpu.MemorySpace.SMEM),  # b
                # Whole image per batch element; index_map constant over the
                # row-tile axis -> stays resident in VMEM (one DMA per image).
                pl.BlockSpec((1, C, H_in, W_in), lambda n, i: (n, 0, 0, 0)),
                # Banded Wy slab selected by the row-tile index.
                pl.BlockSpec((None, TM, K_band), lambda n, i: (i, 0, 0)),
                # Grid-invariant column-resize matrix.
                pl.BlockSpec((W_in, W_out), lambda n, i: (0, 0)),
            ],
            out_specs=pl.BlockSpec((1, C, TM, W_out),
                                   lambda n, i: (n, 0, i, 0)),
        ),
        compiler_params=pltpu.CompilerParams(
            dimension_semantics=("parallel", "parallel"),
            vmem_limit_bytes=32 * 1024 * 1024),
        cost_estimate=pl.CostEstimate(flops=flops, transcendentals=0,
                                      bytes_accessed=bytes_accessed),
    )(starts, a, b, x_u8, wy, wxt)


@jax.jit
def count_token_mismatch(input_ids, output_ids):
    """n_diff_input_output = (input_ids != output_ids[:, :L]).sum().
    Plain fused JAX by design: the reduction is over ~L int32s, so a dedicated
    pallas_call would be pure launch/DMA overhead."""
    L = input_ids.shape[1]
    return jnp.sum(input_ids != output_ids[:, :L])


if __name__ == "__main__":
    key = jax.random.PRNGKey(0)
    k1, k2, k_in, k_out = jax.random.split(key, 4)

    mean = np.asarray(CLIP_MEAN, np.float32)
    std = np.asarray(CLIP_STD, np.float32)

    def references(image_u8, out_hw):
        N, C, H_in, W_in = image_u8.shape
        H_out, W_out = out_hw
        wy, _, _ = _bilinear_weights(H_out, H_in)
        wx, _, _ = _bilinear_weights(W_out, W_in)
        x = np.asarray(image_u8, np.float32)
        # Reference 1: exact f32 math (normalize first, then separable bilinear).
        xn = (x * RESCALE - mean[None, :, None, None]) / std[None, :, None, None]
        ref_exact = np.einsum('oh,nchw,kw->ncok', wy, xn, wx)
        # Reference 2: matched bf16 operand rounding (tight tolerance).
        wy_bf = jnp.asarray(wy, jnp.bfloat16)
        wxt_bf = jnp.asarray(wx.T, jnp.bfloat16)
        x_bf = jnp.asarray(x, jnp.bfloat16)
        tmp = jnp.einsum('oh,nchw->ncow', wy_bf, x_bf,
                         preferred_element_type=jnp.float32)
        res = jnp.einsum('ncow,wk->ncok', tmp.astype(jnp.bfloat16), wxt_bf,
                         preferred_element_type=jnp.float32)
        a_h = RESCALE / std
        b_h = -mean / std
        ref_bf = res * a_h[None, :, None, None] + b_h[None, :, None, None]
        return ref_exact, np.asarray(ref_bf)

    def run_case(k, shape_in, out_hw, row_tile):
        N, C, H_in, W_in = shape_in
        img = jax.random.randint(k, shape_in, 0, 256,
                                 dtype=jnp.int32).astype(jnp.uint8)
        out = clip_normalize_bilinear_resize(img, mean, std, out_hw,
                                             row_tile=row_tile)
        out = jax.block_until_ready(out)
        assert out.shape == (N, C) + tuple(out_hw)
        assert out.dtype == jnp.bfloat16
        out_f32 = np.asarray(out.astype(jnp.float32))
        ref_exact, ref_bf = references(img, out_hw)
        assert np.allclose(out_f32, ref_exact, atol=1e-1), \
            float(np.max(np.abs(out_f32 - ref_exact)))
        assert np.allclose(out_f32, ref_bf, atol=3e-2), \
            float(np.max(np.abs(out_f32 - ref_bf)))

    # Case 1: row-tiled + band-sparse path (downscale 64 -> 32: two row tiles,
    # nonzero dynamic band offset on the second tile).
    run_case(k1, (2, 3, 64, 64), (32, 32), row_tile=16)
    # Case 2: fallback path (upscale 16 -> 32: band == full input height).
    run_case(k2, (2, 3, 16, 16), (32, 32), row_tile=16)

    # Token-mismatch reduction (input_ids vs output_ids[:, :L]).
    L = 8
    input_ids = jax.random.randint(k_in, (1, L), 0, 32000, dtype=jnp.int32)
    gen_ids = jax.random.randint(k_out, (1, 4), 0, 32000, dtype=jnp.int32)
    output_ids = jnp.concatenate([input_ids.at[0, 3].add(1), gen_ids], axis=1)
    n_diff = jax.block_until_ready(count_token_mismatch(input_ids, output_ids))
    assert int(n_diff) == 1

    print("KERNEL_OK")
</pallas_src>

<mosaic_0001>
module attributes {stable_mosaic.version = 11 : i64} {
  func.func @_preprocess_kernel(%arg0: i32, %arg1: i32, %arg2: memref<2xi32, #tpu.memory_space<smem>>, %arg3: memref<3xf32, #tpu.memory_space<smem>>, %arg4: memref<3xf32, #tpu.memory_space<smem>>, %arg5: memref<1x3x64x64xi8, #tpu.memory_space<vmem>>, %arg6: memref<1x16x32xbf16, #tpu.memory_space<vmem>>, %arg7: memref<64x32xbf16, #tpu.memory_space<vmem>>, %arg8: memref<1x3x16x32xbf16, #tpu.memory_space<vmem>>) attributes {dimension_semantics = [#tpu.dimension_semantics<parallel>, #tpu.dimension_semantics<parallel>], iteration_bounds = array<i64: 2, 2>, scalar_prefetch = 0 : i64, scratch_operands = 0 : i64, tpu.core_type = #tpu.core_type<tc>, window_params = [{transform_indices = @transform_0, window_bounds = array<i64: 2>}, {transform_indices = @transform_1, window_bounds = array<i64: 3>}, {transform_indices = @transform_2, window_bounds = array<i64: 3>}, {transform_indices = @transform_3, window_bounds = array<i64: 1, 3, 64, 64>}, {transform_indices = @transform_4, window_bounds = array<i64: 1, 16, 32>}, {pipeline_mode = #tpu.pipeline_mode<synchronous>, transform_indices = @transform_5, window_bounds = array<i64: 64, 32>}, {transform_indices = @transform_6, window_bounds = array<i64: 1, 3, 16, 32>}]} {
    %0 = arith.index_cast %arg1 : i32 to index
    %1 = memref.load %arg2[%0] : memref<2xi32, #tpu.memory_space<smem>>
    %2 = tpu.assume_multiple %1, 32 : i32
    %c0 = arith.constant 0 : index
    %c0_0 = arith.constant 0 : index
    %c0_1 = arith.constant 0 : index
    %3 = vector.load %arg6[%c0, %c0_0, %c0_1] : memref<1x16x32xbf16, #tpu.memory_space<vmem>>, vector<1x16x32xbf16>
    %4 = vector.shape_cast %3 : vector<1x16x32xbf16> to vector<16x32xbf16>
    %c0_2 = arith.constant 0 : index
    %c0_3 = arith.constant 0 : index
    %5 = vector.load %arg7[%c0_2, %c0_3] : memref<64x32xbf16, #tpu.memory_space<vmem>>, vector<64x32xbf16>
    %c0_4 = arith.constant 0 : index
    %c0_5 = arith.constant 0 : index
    %6 = arith.index_cast %2 : i32 to index
    %c0_6 = arith.constant 0 : index
    %7 = vector.load %arg5[%c0_4, %c0_5, %6, %c0_6] : memref<1x3x64x64xi8, #tpu.memory_space<vmem>>, vector<1x1x32x64xi8>
    %8 = vector.shape_cast %7 : vector<1x1x32x64xi8> to vector<32x64xi8>
    %9 = arith.uitofp %8 : vector<32x64xi8> to vector<32x64xf32>
    %10 = arith.truncf %9 : vector<32x64xf32> to vector<32x64xbf16>
    %cst = arith.constant dense<0.000000e+00> : vector<16x64xf32>
    %11 = tpu.matmul %4, %10, %cst {dimension_numbers = #tpu.dot_dimension_numbers<[1], [0], [0], [1], [0, 0, 1, 1], [], []>} : vector<16x32xbf16>, vector<32x64xbf16>, vector<16x64xf32> -> vector<16x64xf32>
    %12 = arith.truncf %11 : vector<16x64xf32> to vector<16x64xbf16>
    %c0_7 = arith.constant 0 : index
    %c1 = arith.constant 1 : index
    %13 = arith.index_cast %2 : i32 to index
    %c0_8 = arith.constant 0 : index
    %14 = vector.load %arg5[%c0_7, %c1, %13, %c0_8] : memref<1x3x64x64xi8, #tpu.memory_space<vmem>>, vector<1x1x32x64xi8>
    %15 = vector.shape_cast %14 : vector<1x1x32x64xi8> to vector<32x64xi8>
    %16 = arith.uitofp %15 : vector<32x64xi8> to vector<32x64xf32>
    %17 = arith.truncf %16 : vector<32x64xf32> to vector<32x64xbf16>
    %cst_9 = arith.constant dense<0.000000e+00> : vector<16x64xf32>
    %18 = tpu.matmul %4, %17, %cst_9 {dimension_numbers = #tpu.dot_dimension_numbers<[1], [0], [0], [1], [0, 0, 1, 1], [], []>} : vector<16x32xbf16>, vector<32x64xbf16>, vector<16x64xf32> -> vector<16x64xf32>
    %19 = arith.truncf %18 : vector<16x64xf32> to vector<16x64xbf16>
    %c0_10 = arith.constant 0 : index
    %c2 = arith.constant 2 : index
    %20 = arith.index_cast %2 : i32 to index
    %c0_11 = arith.constant 0 : index
    %21 = vector.load %arg5[%c0_10, %c2, %20, %c0_11] : memref<1x3x64x64xi8, #tpu.memory_space<vmem>>, vector<1x1x32x64xi8>
    %22 = vector.shape_cast %21 : vector<1x1x32x64xi8> to vector<32x64xi8>
    %23 = arith.uitofp %22 : vector<32x64xi8> to vector<32x64xf32>
    %24 = arith.truncf %23 : vector<32x64xf32> to vector<32x64xbf16>
    %cst_12 = arith.constant dense<0.000000e+00> : vector<16x64xf32>
    %25 = tpu.matmul %4, %24, %cst_12 {dimension_numbers = #tpu.dot_dimension_numbers<[1], [0], [0], [1], [0, 0, 1, 1], [], []>} : vector<16x32xbf16>, vector<32x64xbf16>, vector<16x64xf32> -> vector<16x64xf32>
    %26 = arith.truncf %25 : vector<16x64xf32> to vector<16x64xbf16>
    %27 = tpu.concatenate %12, %19, %26 in 0 : vector<16x64xbf16>, vector<16x64xbf16>, vector<16x64xbf16> -> vector<48x64xbf16>
    %cst_13 = arith.constant dense<0.000000e+00> : vector<48x32xf32>
    %28 = tpu.matmul %27, %5, %cst_13 {dimension_numbers = #tpu.dot_dimension_numbers<[1], [0], [0], [1], [0, 0, 1, 1], [], []>} : vector<48x64xbf16>, vector<64x32xbf16>, vector<48x32xf32> -> vector<48x32xf32>
    %29 = vector.extract_strided_slice %28 {offsets = [0, 0], sizes = [16, 32], strides = [1, 1]} : vector<48x32xf32> to vector<16x32xf32>
    %c0_14 = arith.constant 0 : index
    %30 = memref.load %arg3[%c0_14] : memref<3xf32, #tpu.memory_space<smem>>
    %31 = vector.broadcast %30 : f32 to vector<16x32xf32>
    %32 = arith.mulf %29, %31 : vector<16x32xf32>
    %c0_15 = arith.constant 0 : index
    %33 = memref.load %arg4[%c0_15] : memref<3xf32, #tpu.memory_space<smem>>
    %34 = vector.broadcast %33 : f32 to vector<16x32xf32>
    %35 = arith.addf %32, %34 : vector<16x32xf32>
    %36 = arith.truncf %35 : vector<16x32xf32> to vector<16x32xbf16>
    %c0_16 = arith.constant 0 : index
    %c0_17 = arith.constant 0 : index
    %c0_18 = arith.constant 0 : index
    %c0_19 = arith.constant 0 : index
    %37 = vector.load %arg8[%c0_16, %c0_17, %c0_18, %c0_19] : memref<1x3x16x32xbf16, #tpu.memory_space<vmem>>, vector<1x1x16x32xbf16>
    %38 = vector.shape_cast %37 : vector<1x1x16x32xbf16> to vector<16x32xbf16>
    %39 = vector.shape_cast %36 : vector<16x32xbf16> to vector<1x1x16x32xbf16>
    tpu.vector_store %arg8[%c0_16, %c0_17, %c0_18, %c0_19], %39 {strides = array<i32>} : memref<1x3x16x32xbf16, #tpu.memory_space<vmem>>, vector<1x1x16x32xbf16>,
    %40 = vector.extract_strided_slice %28 {offsets = [16, 0], sizes = [16, 32], strides = [1, 1]} : vector<48x32xf32> to vector<16x32xf32>
    %c1_20 = arith.constant 1 : index
    %41 = memref.load %arg3[%c1_20] : memref<3xf32, #tpu.memory_space<smem>>
    %42 = vector.broadcast %41 : f32 to vector<16x32xf32>
    %43 = arith.mulf %40, %42 : vector<16x32xf32>
    %c1_21 = arith.constant 1 : index
    %44 = memref.load %arg4[%c1_21] : memref<3xf32, #tpu.memory_space<smem>>
    %45 = vector.broadcast %44 : f32 to vector<16x32xf32>
    %46 = arith.addf %43, %45 : vector<16x32xf32>
    %47 = arith.truncf %46 : vector<16x32xf32> to vector<16x32xbf16>
    %c0_22 = arith.constant 0 : index
    %c1_23 = arith.constant 1 : index
    %c0_24 = arith.constant 0 : index
    %c0_25 = arith.constant 0 : index
    %48 = vector.load %arg8[%c0_22, %c1_23, %c0_24, %c0_25] : memref<1x3x16x32xbf16, #tpu.memory_space<vmem>>, vector<1x1x16x32xbf16>
    %49 = vector.shape_cast %48 : vector<1x1x16x32xbf16> to vector<16x32xbf16>
    %50 = vector.shape_cast %47 : vector<16x32xbf16> to vector<1x1x16x32xbf16>
    tpu.vector_store %arg8[%c0_22, %c1_23, %c0_24, %c0_25], %50 {strides = array<i32>} : memref<1x3x16x32xbf16, #tpu.memory_space<vmem>>, vector<1x1x16x32xbf16>,
    %51 = vector.extract_strided_slice %28 {offsets = [32, 0], sizes = [16, 32], strides = [1, 1]} : vector<48x32xf32> to vector<16x32xf32>
    %c2_26 = arith.constant 2 : index
    %52 = memref.load %arg3[%c2_26] : memref<3xf32, #tpu.memory_space<smem>>
    %53 = vector.broadcast %52 : f32 to vector<16x32xf32>
    %54 = arith.mulf %51, %53 : vector<16x32xf32>
    %c2_27 = arith.constant 2 : index
    %55 = memref.load %arg4[%c2_27] : memref<3xf32, #tpu.memory_space<smem>>
    %56 = vector.broadcast %55 : f32 to vector<16x32xf32>
    %57 = arith.addf %54, %56 : vector<16x32xf32>
    %58 = arith.truncf %57 : vector<16x32xf32> to vector<16x32xbf16>
    %c0_28 = arith.constant 0 : index
    %c2_29 = arith.constant 2 : index
    %c0_30 = arith.constant 0 : index
    %c0_31 = arith.constant 0 : index
    %59 = vector.load %arg8[%c0_28, %c2_29, %c0_30, %c0_31] : memref<1x3x16x32xbf16, #tpu.memory_space<vmem>>, vector<1x1x16x32xbf16>
    %60 = vector.shape_cast %59 : vector<1x1x16x32xbf16> to vector<16x32xbf16>
    %61 = vector.shape_cast %58 : vector<16x32xbf16> to vector<1x1x16x32xbf16>
    tpu.vector_store %arg8[%c0_28, %c2_29, %c0_30, %c0_31], %61 {strides = array<i32>} : memref<1x3x16x32xbf16, #tpu.memory_space<vmem>>, vector<1x1x16x32xbf16>,
    return
  }
  func.func @transform_0(%arg0: i32, %arg1: i32) -> i32 {
    %c0_i32 = arith.constant 0 : i32
    %c0_i32_0 = arith.constant 0 : i32
    return %c0_i32 : i32
  }
  func.func @transform_1(%arg0: i32, %arg1: i32) -> i32 {
    %c0_i32 = arith.constant 0 : i32
    %c0_i32_0 = arith.constant 0 : i32
    return %c0_i32 : i32
  }
  func.func @transform_2(%arg0: i32, %arg1: i32) -> i32 {
    %c0_i32 = arith.constant 0 : i32
    %c0_i32_0 = arith.constant 0 : i32
    return %c0_i32 : i32
  }
  func.func @transform_3(%arg0: i32, %arg1: i32) -> (i32, i32, i32, i32) {
    %c0_i32 = arith.constant 0 : i32
    %c0_i32_0 = arith.constant 0 : i32
    %c0_i32_1 = arith.constant 0 : i32
    %c0_i32_2 = arith.constant 0 : i32
    return %arg0, %c0_i32, %c0_i32_0, %c0_i32_1 : i32, i32, i32, i32
  }
  func.func @transform_4(%arg0: i32, %arg1: i32) -> (i32, i32, i32) {
    %c0_i32 = arith.constant 0 : i32
    %c0_i32_0 = arith.constant 0 : i32
    %c0_i32_1 = arith.constant 0 : i32
    return %arg1, %c0_i32, %c0_i32_0 : i32, i32, i32
  }
  func.func @transform_5(%arg0: i32, %arg1: i32) -> (i32, i32) {
    %c0_i32 = arith.constant 0 : i32
    %c0_i32_0 = arith.constant 0 : i32
    %c0_i32_1 = arith.constant 0 : i32
    return %c0_i32, %c0_i32_0 : i32, i32
  }
  func.func @transform_6(%arg0: i32, %arg1: i32) -> (i32, i32, i32, i32) {
    %c0_i32 = arith.constant 0 : i32
    %c0_i32_0 = arith.constant 0 : i32
    %c0_i32_1 = arith.constant 0 : i32
    return %arg0, %c0_i32, %arg1, %c0_i32_0 : i32, i32, i32, i32
  }
}

</mosaic_0001>

<bundles_post_ra>
// kernel: tpu_custom_call.1
= control target key start
LH: loop header
LB: loop body
LE: loop exit
PB: predicated region body
PF: predicated region fallthrough
CT: control target
= control target key end

     0   :  { %s1674_s0 = inlined_call_operand.vmem [shape: s32[2], index: 0, kind: input, shape index: {}]   ;;  %s1675_s1 = inlined_call_operand.vmem [shape: f32[3], index: 1, kind: input, shape index: {}]   ;;  %s1676_s2 = inlined_call_operand.vmem [shape: f32[3], index: 2, kind: input, shape index: {}]   ;;  %s1677_s3 = inlined_call_operand.hbm [shape: u8[2,3,64,64], index: 3, kind: input, shape index: {}]   ;;  %s1678_s4 = inlined_call_operand.vmem [shape: bf16[2,16,32], index: 4, kind: input, shape index: {}]   ;;  %s1679_s5 = inlined_call_operand.vmem [shape: bf16[64,32], index: 5, kind: input, shape index: {}]   ;;  %s1680_s6 = inlined_call_operand.hbm [shape: bf16[2,3,32,32], index: 6, kind: output, shape index: {}]  }
   0x1   :  { %1691 = sst [smem:[#allocation22_spill]] %s1674_s0 }
   0x2   :  { %1692 = sst [smem:[#allocation23_spill]] %s1675_s1 }
   0x3   :  { %1693 = sst [smem:[#allocation24_spill]] %s1676_s2 }
   0x4   :  { %1694 = sst [smem:[#allocation25_spill]] %s1680_s6 }
   0x5   :  { %11 = vsyncpa [#allocation5], 0 }
   0x6   :  { %12 = vsyncpa [#allocation7], 0 }
   0x7   :  { %13 = vsyncpa [#allocation3], 0 }
   0x8   :  { %15 = vsyncpa [#allocation3 + $0x1], 0 }
   0x9   :  { %16 = vsyncpa [#allocation4], 0 }
   0xa   :  { %18 = vsyncpa [#allocation4 + $0x1], 0  ;;  %s1345_s21 = smov 0   ;;  %s1347_s22 = smov 0  }
   0xb   :  { %s1349_s23 = smov 0   ;;  %s1351_s24 = smov 0  }
   0xc   :  { %s1353_s25 = smov 0   ;;  %s1355_s26 = smov 0  }
   0xd   :  { %s1357_s27 = smov 0   ;;  %s1359_s28 = smov 0  }
   0xe   :  { %s1361_s29 = smov 0   ;;  %s1363_s30 = smov 0  }
   0xf   :  { %s1365_s7 = smov 0  }
  0x10 LB: > { %1695 = sst [smem:[#allocation17_spill]] %s1253_s21  ;;  %s841_s8 = sadd.s32 4294967295, %s1293_s7   ;;  %s1293_s7 = sphi %s1365_s7, %s24_s7   ;;  %s1289_s30 = sphi %s1363_s30, %s1730_s30   ;;  %s1285_s29 = sphi %s1361_s29, %s1721_s29   ;;  %s1281_s28 = sphi %s1359_s28, %s1729_s28   ;;  %s1277_s27 = sphi %s1357_s27, %s1720_s27   ;;  %s1273_s26 = sphi %s1355_s26, %s1728_s26   ;;  %s1269_s25 = sphi %s1353_s25, %s1727_s25   ;;  %s1265_s24 = sphi %s1351_s24, %s1726_s24   ;;  %s1261_s23 = sphi %s1349_s23, %s1725_s23   ;;  %s1257_s22 = sphi %s1347_s22, %s1724_s22   ;;  %s1253_s21 = sphi %s1345_s21, %s1723_s21  }
  0x11   : > { %1696 = sst [smem:[#allocation18_spill]] %s1285_s29  ;;  %s842_s9 = sadd.s32 4294967294, %s1293_s7  }
  0x12   : > { %p119_p0 = scmp.ne.s32.totalorder %s1269_s25, %s1265_s24  ;;  %p1401_p1 = scmp.eq.s32.totalorder %s841_s8, 0 }
  0x13   : > { %p191_p2 = scmp.ne.s32.totalorder %s1261_s23, %s1257_s22  ;;  %p192_p4 = scmp.eq.s32.totalorder %s841_s8, 3 }
  0x14   : > { %s1697_s10 = scalar_select %p1401_p1, 1, 0 }
  0x15   : > { %p1410_p3 = por %p1401_p1, %p119_p0  ;;  %p197_p5 = scmp.ne.s32.totalorder %s1257_s22, %s1253_s21 }
  0x16   : > { %p198_p6 = scmp.eq.s32.totalorder %s842_s9, 3  ;;  %p1416_p7 = por %p192_p4, %p191_p2 }
  0x17   : > { %s1698_s12 = scalar_select %p1410_p3, 1, 0 }
  0x18   : > { %s1699_s13 = scalar_select %p1416_p7, 1, 0 }
  0x19   : > { %p843_p8 = scmp.ge.s32.totalorder %s1293_s7, 1  ;;  %p1421_p9 = por %p198_p6, %p197_p5 }
  0x1a   : > { %p205_p10 = scmp.lt.s32.totalorder %s1293_s7, 5  ;;  %s1702_s1 = sld [smem:[#allocation23_spill]] }
  0x1b   : > { %s1700_s14 = scalar_select %p1421_p9, 1, 0 }
  0x1c   : > { %p1429_p11 = pnand %p843_p8, %p205_p10  ;;  %s1705_s0 = sld [smem:[#allocation22_spill]] }
  0x1d   : > { %1701 = sst [smem:[#allocation19_spill]] %s1700_s14 }
  0x1e   : > { %s1703_s18 = scalar_select %p1429_p11, 1, 0 }
  0x1f   : > { %p983_p12 = pneg %p1429_p11 }
  0x20   : > { %s229_s17 = sshll.u32 %s1702_s1, 4  ;;  %s230_s17 = int_to_ptr.vmem [resolvable:$true] %s229_s17 }
  0x21   : > { %p1437_p13 = pnand %p983_p12, %p1401_p1  ;;  %s1116_s9 = scalar_lea.vmem %s230_s17, 16 }
  0x22   : > { %s218_s8 = sshll.u32 %s1705_s0, 4  ;;  %p1117_p0 = scmp.ne.s32.totalorder %s230_s17, %s1116_s9  ;;  %s219_s8 = int_to_ptr.vmem [resolvable:$true] %s218_s8 }
  0x23   : > { %p1118_p2 = pneg %p1437_p13  ;;  %p1124_p6 = scmp.lt.s32.totalorder %s230_s17, %s230_s17 }
  0x24   : > { %p1125_p8 = scmp.lt.s32.totalorder %s1116_s9, %s1116_s9 }
  0x25   : > { %p1119_p4 = pnand %p1118_p2, %p1117_p0 }
  0x26   : > { %p1126_p10 = por %p1125_p8, %p1124_p6 }
  0x27   : > { %p1120_p5 = pneg %p1119_p4 }
  0x29   : > { %p1127_p12 = pnand %p1126_p10, %p1120_p5 }
  0x2b   : > { %1130 = shalt.err (!%p1127_p12)
}
  0x2c   : > { %s1295_s15 = smov [#allocation6]   ;;  %s1131_s16 = scalar_lea.vmem %s219_s8, 16 }
  0x2d   : > { %989 = dma.vmem_to_smem (!%p1437_p13), %s230_s17, 16, %s1295_s15, [#allocation7]  }
  0x2e   : > { %p1132_p9 = scmp.ne.s32.totalorder %s219_s8, %s1131_s16  ;;  %p1139_p1 = scmp.lt.s32.totalorder %s219_s8, %s219_s8 }
  0x2f   : > { %p1140_p11 = scmp.lt.s32.totalorder %s1131_s16, %s1131_s16 }
  0x30   : > { %p1134_p7 = pnand %p1132_p9, %p1118_p2 }
  0x31   : > { %p1141_p0 = por %p1140_p11, %p1139_p1 }
  0x32   : > { %p1135_p3 = pneg %p1134_p7 }
  0x34   : > { %p1142_p4 = pnand %p1141_p0, %p1135_p3 }
  0x36   : > { %1145 = shalt.err (!%p1142_p4)
}
  0x37   : > { %s1296_s20 = smov [#allocation2]   ;;  %s1706_s2 = sld [smem:[#allocation24_spill]] }
  0x38   : > { %986 = dma.vmem_to_smem (!%p1437_p13), %s219_s8, 16, %s1296_s20, [#allocation5]  }
  0x3d   : > { %s240_s17 = sshll.u32 %s1706_s2, 4  ;;  %s241_s17 = int_to_ptr.vmem [resolvable:$true] %s240_s17 }
  0x3e   : > { %s1146_s15 = scalar_lea.vmem %s241_s17, 16  ;;  %p1154_p6 = scmp.lt.s32.totalorder %s241_s17, %s241_s17 }
  0x3f   : > { %p1147_p5 = scmp.ne.s32.totalorder %s241_s17, %s1146_s15  ;;  %p1155_p1 = scmp.lt.s32.totalorder %s1146_s15, %s1146_s15 }
  0x41   : > { %p1149_p7 = pnand %p1147_p5, %p1118_p2  ;;  %p1156_p3 = por %p1155_p1, %p1154_p6 }
  0x43   : > { %p1150_p9 = pneg %p1149_p7 }
  0x45   : > { %p1157_p11 = pnand %p1156_p3, %p1150_p9 }
  0x47   : > { %1160 = shalt.err (!%p1157_p11)
}
  0x48   : > { %s1297_s16 = smov [#allocation8]   ;;  %s33_s8 = sadd.s32 1, %s1285_s29 }
  0x49   : > { %992 = dma.vmem_to_smem (!%p1437_p13), %s241_s17, 16, %s1297_s16, [#allocation7]  }
  0x4a   : > { %p34_p2 = scmp.ge.s32.totalorder %s33_s8, 2  ;;  %s36_s20 = sadd.s32 1, %s1289_s30 }
  0x4b   : > { %s106_s24 = sadd.s32 1, %s1273_s26  ;;  %p113_p8 = scmp.ne.s32.totalorder %s1273_s26, %s1269_s25 }
  0x4c   : > { %s1732_s8 = smov (%p34_p2, %s33_s8), 0  ;;  %s1734_s20 = smov (!%p34_p2, %s36_s20), %s1289_s30 }
  0x4d   : > { %1707 = sst [smem:[#allocation20_spill]] %s1732_s8  ;;  %p114_p10 = scmp.eq.s32.totalorder %s1293_s7, 0 }
  0x4e   : > { %s177_s19 = ssub.s32 %s1285_s29, %s1732_s8  ;;  %p38_p12 = scmp.ge.s32.totalorder %s1734_s20, 2 }
  0x4f   : > { %p1004_p0 = scmp.lt.s32.totalorder %s1293_s7, 4  ;;  %p1476_p13 = por %p114_p10, %p113_p8 }
  0x50   : > { %s254_s17 = sand.u32 1, %s1273_s26   ;;  %s1736_s20 = smov (%p38_p12, %s1734_s20), 0 }
  0x51   : > { %1709 = sst [smem:[#allocation21_spill]] %s1736_s20  ;;  %s956_s15 = smul.u32 48, %s254_s17 }
  0x52   : > { %s103_s16 = ssub.s32 %s1289_s30, %s1736_s20  ;;  %s957_s11 = smul.u32 768, %s1289_s30 }
  0x53   : > { %p104_p4 = scmp.eq.s32.totalorder %s103_s16, 0  ;;  %s178_s0 = sor.u32 %s177_s19, %s103_s16 }
  0x54   : > { %p179_p5 = scmp.eq.s32.totalorder %s178_s0, 0  ;;  %s1710_s2 = sadd.s32 1, %s1261_s23 }
  0x55   : > { %s1487_s1 = scalar_select %p104_p4, %s1273_s26, %s106_s24  }
  0x56   : > { %s1492_s8 = scalar_select %p179_p5, %s1261_s23, %s1710_s2  }
  0x57   : > { %s1497_s21 = scalar_lea.hbm %s1677_s3, %s957_s11  ;;  %s258_s6 = scalar_lea.vmem [#allocation9], %s956_s15 }
  0x58   : > { %s265_s20 = sshll.u32 %s258_s6, 4  ;;  %p1505_p7 = pnand %p1004_p0, %p1476_p13  ;;  %s1499_s20 = int_to_ptr.vmem [resolvable:$true] %s265_s20 }
  0x59   : > { %s1509_s2 = scalar_lea.sflag [#allocation3], %s254_s17  ;;  %s1161_s29 = scalar_lea.hbm %s1497_s21, 768 }
  0x5a   : > { %p1162_p9 = scmp.ne.s32.totalorder %s1497_s21, %s1161_s29  ;;  %p1163_p6 = pneg %p1505_p7 }
  0x5b   : > { %s1166_s14 = scalar_lea.hbm %s1677_s3, 1536  ;;  %p1167_p11 = scmp.lt.u32.totalorder %s1497_s21, %s1677_s3 }
  0x5c   : > { %p1164_p1 = pnand %p1163_p6, %p1162_p9  ;;  %p1168_p2 = scmp.lt.u32.totalorder %s1166_s14, %s1161_s29 }
  0x5d   : > { %p1170_p10 = scmp.lt.u32.totalorder %s1161_s29, %s1497_s21 }
  0x5e   : > { %p1165_p3 = pneg %p1164_p1  ;;  %p1169_p8 = por %p1168_p2, %p1167_p11 }
  0x60   : > { %p1171_p12 = por %p1170_p10, %p1169_p8 }
  0x62   : > { %p1172_p0 = pnand %p1171_p12, %p1165_p3 }
  0x64   : > { %1175 = shalt.err (!%p1172_p0)
}
  0x65   : > { %s1176_s9 = scalar_lea.vmem %s1499_s20, 768  ;;  %s1298_s17 = smov [#allocation9]  }
  0x66   : > { %p1177_p13 = scmp.ne.s32.totalorder %s1499_s20, %s1176_s9  ;;  %s1181_s15 = sshll.u32 %s1298_s17, 4  ;;  %s1182_s15 = int_to_ptr.vmem [resolvable:$false] %s1181_s15 }
  0x67   : > { %s1183_s16 = scalar_lea.vmem %s1182_s15, 1536  ;;  %p1184_p9 = scmp.lt.s32.totalorder %s1499_s20, %s1182_s15 }
  0x68   : > { %p1179_p4 = pnand %p1177_p13, %p1163_p6  ;;  %p1185_p1 = scmp.lt.s32.totalorder %s1183_s16, %s1176_s9 }
  0x6a   : > { %p1180_p5 = pneg %p1179_p4  ;;  %p1186_p11 = por %p1185_p1, %p1184_p9 }
  0x6c   : > { %p1187_p2 = pnand %p1186_p11, %p1180_p5 }
  0x6e   : > { %1190 = shalt.err (!%p1187_p2)
}
  0x6f   : > { %s1299_s29 = smov 128   ;;  %s1300_s6 = smov 8  }
  0x70   : > { %996 = dma.hbm_to_vmem [thread:$0]  (!%p1505_p7), %s1497_s21, 768, %s1499_s20, %s1509_s2, %s1299_s29, %s1299_s29, %s1300_s6  }
  0x71   : > { %p1712_p6 = scmp.ne.s32.totalorder %s1703_s18, 0 }
  0x72   : > { %p1713_p3 = scmp.ne.s32.totalorder (!%p1712_p6), %s1697_s10, 0 }
  0x73   : > { %285 = sbr.rel (%p1712_p6) target bundleno = 616 (0x268), region = 44 }
  0x7a   : > { %1236 = dma.done.wait (%p1713_p3), [#allocation5], 16  }
  0x7b   : > { %1238 = vsyncadd (%p1713_p3), [#allocation5], 4294967280 }
  0x7c   : > { %1240 = dma.done.wait (%p1713_p3), [#allocation7], 32  }
  0x7d   : > { %1242 = vsyncadd (%p1713_p3), [#allocation7], 4294967264  ;;  %s299_s11 = sand.u32 1, %s1269_s25   ;;  %p1714_p7 = scmp.ne.s32.totalorder %s1698_s12, 0 }
  0x7e   : > { %s958_s0 = smul.u32 48, %s299_s11  ;;  %s300_s21 = scalar_lea.sflag [#allocation3], %s299_s11 }
  0x80   : > { %s303_s20 = scalar_lea.vmem [#allocation9], %s958_s0 }
  0x81   : > { %1244 = dma.done.wait (%p1714_p7), %s300_s21, 768  }
  0x82   : > { %1246 = vsyncadd (%p1714_p7), %s300_s21, 4294966528 }
  0x83   : > { %308 = sfence }
  0x84   : > { %s345_s18 = sld [smem:[#allocation2 + %s1277_s27]]  ;;  %p338_p8 = scmp.lt.s32.totalorder %s1277_s27, 1  ;;  %v1112_v0 = vld [vmem:[%s1679_s5] sm:$0xff]   ;;  %v1301_v1 = vmov 0.0   ;;  %vm1302_vm0 = vmmov 0   ;;  %v1113_v2 = vld [vmem:[%s1679_s5 + $0x8] sm:$0xff]  }
  0x85   : > { %912 = vmatprep.subr.bf16.mxu0 %v1301_v1  ;;  %916 = vmatprep.mubr.msk.bf16.mxu0 %vm1302_vm0, %v1301_v1  ;;  %v1114_v3 = vld [vmem:[%s1679_s5 + $0x10] sm:$0xff]   ;;  %vm368_vm1 = vcmask 261120   ;;  %v1115_v14 = vld [vmem:[%s1679_s5 + $0x18] sm:$0xff]   ;;  %vm534_vm2 = vcmask 523264   ;;  %s601_s2 = sld [smem:[#allocation6]]  ;;  %s874_s24 = sld [smem:[#allocation8 + $0x1]] }
  0x86   : > { %s339_s14 = scalar_select %p338_p8, %s1277_s27, 1  ;;  %936 = vmatprep.subr.bf16.mxu1 %v1301_v1  ;;  %944 = vmatprep.mubr.msk.bf16.mxu1 %vm1302_vm0, %v1301_v1  ;;  %vm617_vm3 = vcmask 257024  }
  0x87   : > { %937 = vmatpush3.bf16.msra.mxu1 %v1112_v0  ;;  %s605_s10 = sld [smem:[#allocation8]]  ;;  %s880_s17 = sld [smem:[#allocation8 + $0x2]] }
  0x88   : > { %s889_s19 = sshll.u32 %s339_s14, 3  ;;  %938 = vmatprep.subr.bf16.mxu1 %v1301_v1  ;;  %s873_s14 = sld [smem:[#allocation6 + $0x1]] }
  0x89   : > { %s342_s15 = scalar_lea.vmem %s1678_s4, %s889_s19  ;;  %s879_s19 = sld [smem:[#allocation6 + $0x2]] }
  0x8a   : > { %s356_s16 = sshra.s32 %s345_s18, 5  ;;  %v1111_v8 = vld [vmem:[%s342_s15] sm:$0xff]   ;;  %s335_s18 = sand.u32 1, %s1257_s22  }
  0x8b   : > { %s855_s29 = sshll.u32 %s356_s16, 3  ;;  %939 = vmatpush3.bf16.msra.mxu1 %v1113_v2  ;;  %v602_v30 = vstv %s601_s2  ;;  %s959_s12 = smul.u32 24, %s335_s18  ;;  %v625_v44 = vstv %s874_s24 }
  0x8c   : > { %s359_s0 = scalar_lea.vmem %s303_s20, %s855_s29 [#allocation9]  ;;  %940 = vmatprep.subr.bf16.mxu1 %v1301_v1  ;;  %s659_s15 = scalar_lea.sflag [#allocation4], %s335_s18 }
  0x8d   : > { %v360_v4 = vld [vmem:[%s359_s0] sm:$0xff]  ;;  %v859_v7 = vld [vmem:[%s359_s0 + $0x10] sm:$0xff]  ;;  %v606_v32 = vstv %s605_s10  ;;  %s1601_s9 = scalar_lea.vmem [#allocation10], %s959_s12  ;;  %v644_v56 = vstv %s880_s17 }
  0x8e   : > { %v361_v5 = vunpack.c.l.u8.bf16 %v360_v4  ;;  %v362_v6 = vunpack.c.h.u8.bf16 %v360_v4  ;;  %v418_v9 = vunpack.c.l.u8.bf16 %v859_v7  ;;  %v419_v10 = vunpack.c.h.u8.bf16 %v859_v7  ;;  %v862_v11 = vld [vmem:[%s359_s0 + $0x20] sm:$0xff] }
  0x8f   : > { %941 = vmatpush3.bf16.msra.mxu1 %v1114_v3  ;;  %v466_v12 = vunpack.c.l.u8.bf16 %v862_v11  ;;  %v467_v13 = vunpack.c.h.u8.bf16 %v862_v11  ;;  %v621_v41 = vstv %s873_s14  ;;  %v640_v53 = vstv %s879_s19 }
  0x90   : > { %913 = vmatpush3.bf16.msra.mxu0 %v361_v5  ;;  %942 = vmatprep.subr.bf16.mxu1 %v1301_v1 }
  0x91   : > { %914 = vmatprep.subr.bf16.mxu0 %v1301_v1 }
  0x93   : > { %943 = vmatpush3.bf16.msra.mxu1 %v1115_v14 }
  0x94   : > { %915 = vmatpush3.bf16.msra.mxu0 %v362_v6 }
  0x95   : > { %920 = vmatprep.subr.bf16.mxu0 %v1301_v1 }
  0x97   : > { %917 = vmatmul.mubr.msk.bf16.vlgmr.msra.gmra.mrb[0].mxu0 %vm368_vm1, %v1111_v8 }
  0x98   : > { %921 = vmatpush3.bf16.msra.mxu0 %v418_v9  ;;  %924 = vmatprep.mubr.msk.bf16.mxu0 %vm1302_vm0, %v1301_v1 }
  0x99   : > { %922 = vmatprep.subr.bf16.mxu0 %v1301_v1 }
  0x9c   : > { %923 = vmatpush3.bf16.msra.mxu0 %v419_v10 }
  0x9d   : > { %928 = vmatprep.subr.bf16.mxu0 %v1301_v1 }
  0x9f   : > { %925 = vmatmul.mubr.msk.bf16.vlgmr.msra.gmra.mrb[4].mxu0 %vm368_vm1, %v1111_v8 }
  0xa0   : > { %929 = vmatpush3.bf16.msra.mxu0 %v466_v12  ;;  %932 = vmatprep.mubr.msk.bf16.mxu0 %vm1302_vm0, %v1301_v1 }
  0xa1   : > { %930 = vmatprep.subr.bf16.mxu0 %v1301_v1 }
  0xa4   : > { %931 = vmatpush3.bf16.msra.mxu0 %v467_v13 }
  0xa7   : > { %933 = vmatmul.mubr.msk.bf16.vlgmr.msra.gmra.mrb[8].mxu0 %vm368_vm1, %v1111_v8 }
 0x16a   : > { %v406_v15 = vpop.f32.mrb[0].mxu0 }
 0x16b   : > { %v918_v16 = vpop.f32.mrb[1].mxu0 }
 0x16c   : > { %v409_v17 = vpop.f32.mrb[2].mxu0 }
 0x16d   : > { %v413_v18 = vpack.c.bf16 %v409_v17, %v406_v15  ;;  %v919_v19 = vpop.f32.mrb[3].mxu0 }
 0x16f   : > { %945 = vmatmul.mubr.msk.bf16.vlgmr.msra.gmra.mrb[0].mxu1 %vm534_vm2, %v413_v18 }
 0x170   : > { %948 = vmatprep.mubr.msk.bf16.mxu1 %vm1302_vm0, %v1301_v1 }
 0x172   : > { %v454_v20 = vpop.f32.mrb[4].mxu0 }
 0x173   : > { %v926_v21 = vpop.f32.mrb[5].mxu0 }
 0x174   : > { %v457_v22 = vpop.f32.mrb[6].mxu0 }
 0x175   : > { %v461_v23 = vpack.c.bf16 %v457_v22, %v454_v20  ;;  %v927_v24 = vpop.f32.mrb[7].mxu0 }
 0x177   : > { %949 = vmatmul.mubr.msk.bf16.gmra.mrb[4].mxu1 %vm534_vm2, %v461_v23 }
 0x178   : > { %952 = vmatprep.mubr.msk.bf16.mxu1 %vm1302_vm0, %v1301_v1 }
 0x17a   : > { %v502_v25 = vpop.f32.mrb[8].mxu0 }
 0x17b   : > { %v934_v26 = vpop.f32.mrb[9].mxu0 }
 0x17c   : > { %v505_v27 = vpop.f32.mrb[10].mxu0 }
 0x17d   : > { %v509_v28 = vpack.c.bf16 %v505_v27, %v502_v25  ;;  %v935_v29 = vpop.f32.mrb[11].mxu0 }
 0x17f   : > { %953 = vmatmul.mubr.msk.bf16.gmra.mrb[8].mxu1 %vm534_vm2, %v509_v28 }
 0x242   : > { %v578_v31 = vpop.f32.mrb[0].mxu1 }
 0x243   : > { %v603_v33 = vmul.f32 %v602_v30, %v578_v31  ;;  %v946_v34 = vpop.f32.mrb[1].mxu1 }
 0x244   : > { %v581_v35 = vpop.f32.mrb[2].mxu1 }
 0x245   : > { %v607_v36 = vadd.f32 %v606_v32, %v603_v33  ;;  %v604_v37 = vmul.f32 %v602_v30, %v581_v35  ;;  %v947_v38 = vpop.f32.mrb[3].mxu1 }
 0x247   : > { %v890_v39 = vpack.c.bf16 %v607_v36, %v607_v36  ;;  %v608_v40 = vadd.f32 %v606_v32, %v604_v37 }
 0x249   : > { %618 = vst.msk [vmem:[%s1601_s9] sm:$0xf] %vm617_vm3, %v890_v39  ;;  %v891_v42 = vpack.c.bf16 %v608_v40, %v608_v40 }
 0x24a   : > { %v586_v43 = vpop.f32.mrb[4].mxu1 }
 0x24b   : > { %619 = vst.msk [vmem:[%s1601_s9 + $0x4] sm:$0xf] %vm617_vm3, %v891_v42  ;;  %v622_v45 = vmul.f32 %v621_v41, %v586_v43  ;;  %v950_v46 = vpop.f32.mrb[5].mxu1 }
 0x24c   : > { %v589_v47 = vpop.f32.mrb[6].mxu1 }
 0x24d   : > { %v626_v48 = vadd.f32 %v625_v44, %v622_v45  ;;  %v623_v49 = vmul.f32 %v621_v41, %v589_v47  ;;  %v951_v50 = vpop.f32.mrb[7].mxu1 }
 0x24f   : > { %v892_v51 = vpack.c.bf16 %v626_v48, %v626_v48  ;;  %v627_v52 = vadd.f32 %v625_v44, %v623_v49 }
 0x251   : > { %877 = vst.msk [vmem:[%s1601_s9 + $0x8] sm:$0xf] %vm617_vm3, %v892_v51  ;;  %v893_v54 = vpack.c.bf16 %v627_v52, %v627_v52 }
 0x252   : > { %v594_v55 = vpop.f32.mrb[8].mxu1 }
 0x253   : > { %878 = vst.msk [vmem:[%s1601_s9 + $0xc] sm:$0xf] %vm617_vm3, %v893_v54  ;;  %v641_v57 = vmul.f32 %v640_v53, %v594_v55  ;;  %v954_v58 = vpop.f32.mrb[9].mxu1 }
 0x254   : > { %v597_v59 = vpop.f32.mrb[10].mxu1 }
 0x255   : > { %v645_v60 = vadd.f32 %v644_v56, %v641_v57  ;;  %v642_v61 = vmul.f32 %v640_v53, %v597_v59  ;;  %v955_v62 = vpop.f32.mrb[11].mxu1 }
 0x257   : > { %v894_v63 = vpack.c.bf16 %v645_v60, %v645_v60  ;;  %v646_v0 = vadd.f32 %v644_v56, %v642_v61 }
 0x259   : > { %883 = vst.msk [vmem:[%s1601_s9 + $0x10] sm:$0xf] %vm617_vm3, %v894_v63  ;;  %v895_v1 = vpack.c.bf16 %v646_v0, %v646_v0 }
 0x25b   : > { %884 = vst.msk [vmem:[%s1601_s9 + $0x14] sm:$0xf] %vm617_vm3, %v895_v1 }
 0x25c   : > { %s885_s16 = sshll.u32 %s1277_s27, 1  ;;  %s960_s29 = smul.u32 12, %s1281_s28 }
 0x25d   : > { %s690_s6 = sshll.u32 %s1601_s9, 4  ;;  %s1303_s21 = smov 128   ;;  %s691_s6 = int_to_ptr.vmem [resolvable:$true] %s690_s6 }
 0x25e   : > { %s671_s11 = sadd.s32 %s960_s29, %s885_s16  ;;  %p1715_p10 = scmp.ne.s32.totalorder %s1699_s13, 0 }
 0x25f   : > { %s886_s0 = sshll.u32 %s671_s11, 6  ;;  %s1716_s2 = sld [smem:[#allocation25_spill]] }
 0x260   : > { %975 = sst [smem:[#allocation12]] (%p1715_p10), %s1303_s21  ;;  %s1304_s14 = smov 256  }
 0x261   : > { %976 = sst [smem:[#allocation12 + $0x1]] (%p1715_p10), %s1304_s14  ;;  %s1305_s12 = smov 2  }
 0x262   : > { %977 = sst [smem:[#allocation12 + $0x2]] (%p1715_p10), %s1305_s12  ;;  %s1306_s27 = smov 64  }
 0x263   : > { %978 = sst [smem:[#allocation12 + $0x3]] (%p1715_p10), %s1306_s27  ;;  %s1307_s28 = smov 4  }
 0x264   : > { %979 = sst [smem:[#allocation12 + $0x4]] (%p1715_p10), %s1306_s27  ;;  %s1308_s24 = smov [#allocation11]  }
 0x265   : > { %s673_s10 = scalar_lea.hbm %s1716_s2, %s886_s0  ;;  %980 = sst [smem:[#allocation12 + $0x5]] (%p1715_p10), %s1307_s28 }
 0x266   : > { %s1309_s19 = smov 0  }
 0x267   : > { %981 = dma.general (%p1715_p10), %s691_s6, 384, %s673_s10, %s659_s15, %s1308_s24, [#allocation12], %s1309_s19, 0  }
 0x268 PF: > { %s1717_s9 = sld [smem:[#allocation17_spill]]  ;;  %s1718_s17 = sld [smem:[#allocation19_spill]] }
 0x269   : > { %p1008_p12 = scmp.ge.s32.totalorder %s1293_s7, 2 }
 0x26e   : > { %s718_s16 = sand.u32 1, %s1717_s9   ;;  %p1719_p0 = scmp.ne.s32.totalorder %s1718_s17, 0 }
 0x26f   : > { %s719_s29 = scalar_lea.sflag [#allocation4], %s718_s16 }
 0x270   : > { %p998_p13 = pnand %p1008_p12, %p1719_p0 }
 0x272   : > { %1248 = dma.done.wait (!%p998_p13), %s719_s29, 384  }
 0x273   : > { %1250 = vsyncadd (!%p998_p13), %s719_s29, 4294966912  ;;  %s24_s7 = sadd.s32 1, %s1293_s7   ;;  %s1720_s27 = sld [smem:[#allocation18_spill]] }
 0x274   : > { %p21_p4 = scmp.ge.s32.totalorder %s24_s7, 6   ;;  %s1721_s29 = sld [smem:[#allocation20_spill]] }
 0x275   : > { %s1722_s13 = sld [smem:[#allocation21_spill]]  ;;  %s1723_s21 = smov %s1257_s22 }
 0x276   : > { %s1724_s22 = smov %s1261_s23  ;;  %s1725_s23 = smov %s1492_s8 }
 0x277   : > { %s1726_s24 = smov %s1269_s25  ;;  %s1727_s25 = smov %s1273_s26 }
 0x278   : > { %s1728_s26 = smov %s1487_s1  ;;  %s1729_s28 = smov %s1289_s30 }
 0x279   :  { %23 = sbr.rel (!%p21_p4) target bundleno = 16 (0x10), region = 115 }
 0x27b   : > { %s1730_s30 = smov %s1722_s13 }
 0x280   :  { %724 = vsyncpa [#allocation3], 1 }
 0x281   :  { %726 = vsyncpa [#allocation3 + $0x1], 1 }
 0x282   :  { %727 = vsyncpa [#allocation4], 1 }
 0x283   :  { %729 = vsyncpa [#allocation4 + $0x1], 1 }
 0x284   :  { %730 = vsyncpa [#allocation5], 1 }
 0x285   :  { %732 = vsyncpa [#allocation5 + $0x1], 1 }
 0x286   :  { %733 = vsyncpa [#allocation7], 1 }

</bundles_post_ra>
